<compile_context>
chip_gen: v5e
topology: v5e:2x2
jax: 0.10.0
libtpu: 0.0.40
codegen_flags: <defaults>
</compile_context>

<pallas_src>
import jax
import jax.numpy as jnp
from jax.experimental import pallas as pl
from jax.experimental.pallas import tpu as pltpu


def layer_epilogue_kernel(x_ref, lat_ref, ws_ref, wh_ref, bs_ref, bh_ref, o_ref):
    # x_ref:  (1, C, H*W)   activation for one image (H*W on the lane axis)
    # lat_ref:(1, 1, L)     latent row for this image
    # ws_ref: (C, L)        style-linear weights producing the scale half
    # wh_ref: (C, L)        style-linear weights producing the shift half
    # bs_ref: (C, 1)        scale-half bias, with +1.0 already folded in
    # bh_ref: (C, 1)        shift-half bias
    x = x_ref[0].astype(jnp.float32)                      # (C, HW)

    # LeakyReLU(negative_slope=0.2)
    x = jnp.where(x >= 0.0, x, 0.2 * x)

    # InstanceNorm over spatial dims, eps = 1e-8, fused one-pass statistics:
    #   var = E[x^2] - E[x]^2  ==  E[(x - E[x])^2]
    mu = jnp.mean(x, axis=1, keepdims=True)               # (C, 1)  lane reduce (XLU)
    m2 = jnp.mean(x * x, axis=1, keepdims=True)           # (C, 1)
    var = m2 - mu * mu
    xn = (x - mu) * jax.lax.rsqrt(var + 1e-8)             # (C, HW)

    # ApplyStyle: style = Linear(latent); out = xn * (scale + 1) + shift
    lat = lat_ref[0].astype(jnp.float32)                  # (1, L)
    scale = jnp.sum(ws_ref[...] * lat, axis=1, keepdims=True) + bs_ref[...]  # (C, 1), +1 folded
    shift = jnp.sum(wh_ref[...] * lat, axis=1, keepdims=True) + bh_ref[...]  # (C, 1)

    o_ref[0] = (xn * scale + shift).astype(o_ref.dtype)


def layer_epilogue(x_nchw, latent, style_w, style_b, noise=None):
    """LayerEpilogue forward.

    x_nchw : (N, C, H, W)   activation
    latent : (N, L)         dlatents_in_slice
    style_w: (2*C, L)       ApplyStyle nn.Linear weight (PyTorch layout)
    style_b: (2*C,)         ApplyStyle nn.Linear bias
    noise  : ignored (use_noise=False configuration)
    """
    del noise  # use_noise=False: ApplyNoise path not present in this config
    N, C, H, W = x_nchw.shape
    L = latent.shape[1]
    HW = H * W

    x = x_nchw.reshape(N, C, HW)                 # pure reshape, spatial -> lanes
    lat3 = latent.reshape(N, 1, L)
    w_scale = style_w[:C, :]                     # (C, L)
    w_shift = style_w[C:, :]                     # (C, L)
    b_scale = style_b[:C].reshape(C, 1) + 1.0    # fold the "+1.0" of ApplyStyle
    b_shift = style_b[C:].reshape(C, 1)

    out = pl.pallas_call(
        layer_epilogue_kernel,
        out_shape=jax.ShapeDtypeStruct((N, C, HW), x_nchw.dtype),
        grid_spec=pltpu.PrefetchScalarGridSpec(
            num_scalar_prefetch=0,
            grid=(N,),
            in_specs=[
                pl.BlockSpec((1, C, HW), lambda n: (n, 0, 0)),
                pl.BlockSpec((1, 1, L), lambda n: (n, 0, 0)),
                pl.BlockSpec((C, L), lambda n: (0, 0)),
                pl.BlockSpec((C, L), lambda n: (0, 0)),
                pl.BlockSpec((C, 1), lambda n: (0, 0)),
                pl.BlockSpec((C, 1), lambda n: (0, 0)),
            ],
            out_specs=pl.BlockSpec((1, C, HW), lambda n: (n, 0, 0)),
        ),
        compiler_params=pltpu.CompilerParams(
            dimension_semantics=("parallel",)),
    )(x, lat3, w_scale, w_shift, b_scale, b_shift)

    return out.reshape(N, C, H, W)


def _reference(x_nchw, latent, style_w, style_b):
    # Independent pure-JAX reference mirroring the PyTorch module literally
    # (two-pass InstanceNorm, torch-style Linear / ApplyStyle view).
    xf = x_nchw.astype(jnp.float32)
    h = jnp.where(xf >= 0.0, xf, 0.2 * xf)                      # LeakyReLU(0.2)
    mu = jnp.mean(h, axis=(2, 3), keepdims=True)                # InstanceNorm
    hc = h - mu
    var = jnp.mean(hc * hc, axis=(2, 3), keepdims=True)
    hn = hc * jax.lax.rsqrt(var + 1e-8)
    style = latent.astype(jnp.float32) @ style_w.T + style_b    # (N, 2C)
    style = style.reshape(-1, 2, x_nchw.shape[1], 1, 1)
    return hn * (style[:, 0] + 1.0) + style[:, 1]


if __name__ == "__main__":
    key = jax.random.PRNGKey(0)
    N, C, H, W = 2, 4, 16, 16      # batch, channels, spatial
    L = 32                         # dlatent_size
    k_x, k_lat, k_w, k_b = jax.random.split(key, 4)

    x = jax.random.normal(k_x, (N, C, H, W), dtype=jnp.float32)
    latent = jax.random.normal(k_lat, (N, L), dtype=jnp.float32)
    style_w = jax.random.normal(k_w, (2 * C, L), dtype=jnp.float32) / jnp.sqrt(float(L))
    style_b = jax.random.normal(k_b, (2 * C,), dtype=jnp.float32) * 0.1

    out = layer_epilogue(x, latent, style_w, style_b)
    jax.block_until_ready(out)

    ref = _reference(x, latent, style_w, style_b)
    assert out.shape == (N, C, H, W)
    assert jnp.max(jnp.abs(out - ref)) < 1e-4

    print("KERNEL_OK")
</pallas_src>

<mosaic_0001>
module attributes {stable_mosaic.version = 11 : i64} {
  func.func @layer_epilogue_kernel(%arg0: i32, %arg1: memref<1x4x256xf32, #tpu.memory_space<vmem>>, %arg2: memref<1x1x32xf32, #tpu.memory_space<vmem>>, %arg3: memref<4x32xf32, #tpu.memory_space<vmem>>, %arg4: memref<4x32xf32, #tpu.memory_space<vmem>>, %arg5: memref<4x1xf32, #tpu.memory_space<vmem>>, %arg6: memref<4x1xf32, #tpu.memory_space<vmem>>, %arg7: memref<1x4x256xf32, #tpu.memory_space<vmem>>) attributes {dimension_semantics = [#tpu.dimension_semantics<parallel>], iteration_bounds = array<i64: 2>, scalar_prefetch = 0 : i64, scratch_operands = 0 : i64, tpu.core_type = #tpu.core_type<tc>, window_params = [{transform_indices = @transform_0, window_bounds = array<i64: 1, 4, 256>}, {transform_indices = @transform_1, window_bounds = array<i64: 1, 1, 32>}, {pipeline_mode = #tpu.pipeline_mode<synchronous>, transform_indices = @transform_2, window_bounds = array<i64: 4, 32>}, {pipeline_mode = #tpu.pipeline_mode<synchronous>, transform_indices = @transform_3, window_bounds = array<i64: 4, 32>}, {pipeline_mode = #tpu.pipeline_mode<synchronous>, transform_indices = @transform_4, window_bounds = array<i64: 4, 1>}, {pipeline_mode = #tpu.pipeline_mode<synchronous>, transform_indices = @transform_5, window_bounds = array<i64: 4, 1>}, {transform_indices = @transform_6, window_bounds = array<i64: 1, 4, 256>}]} {
    %c0 = arith.constant 0 : index
    %c0_0 = arith.constant 0 : index
    %c0_1 = arith.constant 0 : index
    %0 = vector.load %arg1[%c0, %c0_0, %c0_1] : memref<1x4x256xf32, #tpu.memory_space<vmem>>, vector<1x4x256xf32>
    %1 = vector.shape_cast %0 : vector<1x4x256xf32> to vector<4x256xf32>
    %cst = arith.constant 0.000000e+00 : f32
    %2 = vector.broadcast %cst : f32 to vector<4x256xf32>
    %3 = arith.cmpf oge, %1, %2 : vector<4x256xf32>
    %cst_2 = arith.constant 2.000000e-01 : f32
    %4 = vector.broadcast %cst_2 : f32 to vector<4x256xf32>
    %5 = arith.mulf %4, %1 : vector<4x256xf32>
    %6 = arith.select %3, %1, %5 : vector<4x256xi1>, vector<4x256xf32>
    %cst_3 = arith.constant dense<0.000000e+00> : vector<4xf32>
    %7 = vector.multi_reduction <add>, %6, %cst_3 [1] : vector<4x256xf32> to vector<4xf32>
    %8 = vector.shape_cast %7 : vector<4xf32> to vector<4x1xf32>
    %cst_4 = arith.constant 2.560000e+02 : f32
    %9 = vector.broadcast %cst_4 : f32 to vector<4x1xf32>
    %10 = arith.divf %8, %9 : vector<4x1xf32>
    %11 = arith.mulf %6, %6 : vector<4x256xf32>
    %cst_5 = arith.constant dense<0.000000e+00> : vector<4xf32>
    %12 = vector.multi_reduction <add>, %11, %cst_5 [1] : vector<4x256xf32> to vector<4xf32>
    %13 = vector.shape_cast %12 : vector<4xf32> to vector<4x1xf32>
    %cst_6 = arith.constant 2.560000e+02 : f32
    %14 = vector.broadcast %cst_6 : f32 to vector<4x1xf32>
    %15 = arith.divf %13, %14 : vector<4x1xf32>
    %16 = arith.mulf %10, %10 : vector<4x1xf32>
    %17 = arith.subf %15, %16 : vector<4x1xf32>
    %18 = vector.broadcast %10 : vector<4x1xf32> to vector<4x256xf32>
    %19 = arith.subf %6, %18 : vector<4x256xf32>
    %cst_7 = arith.constant 9.99999993E-9 : f32
    %20 = vector.broadcast %cst_7 : f32 to vector<4x1xf32>
    %21 = arith.addf %17, %20 : vector<4x1xf32>
    %22 = math.rsqrt %21 : vector<4x1xf32>
    %23 = vector.broadcast %22 : vector<4x1xf32> to vector<4x256xf32>
    %24 = arith.mulf %19, %23 : vector<4x256xf32>
    %c0_8 = arith.constant 0 : index
    %c0_9 = arith.constant 0 : index
    %c0_10 = arith.constant 0 : index
    %25 = vector.load %arg2[%c0_8, %c0_9, %c0_10] : memref<1x1x32xf32, #tpu.memory_space<vmem>>, vector<1x1x32xf32>
    %26 = vector.shape_cast %25 : vector<1x1x32xf32> to vector<1x32xf32>
    %c0_11 = arith.constant 0 : index
    %c0_12 = arith.constant 0 : index
    %27 = vector.load %arg3[%c0_11, %c0_12] : memref<4x32xf32, #tpu.memory_space<vmem>>, vector<4x32xf32>
    %28 = vector.broadcast %26 : vector<1x32xf32> to vector<4x32xf32>
    %29 = arith.mulf %27, %28 : vector<4x32xf32>
    %cst_13 = arith.constant dense<0.000000e+00> : vector<4xf32>
    %30 = vector.multi_reduction <add>, %29, %cst_13 [1] : vector<4x32xf32> to vector<4xf32>
    %31 = vector.shape_cast %30 : vector<4xf32> to vector<4x1xf32>
    %c0_14 = arith.constant 0 : index
    %c0_15 = arith.constant 0 : index
    %32 = vector.load %arg5[%c0_14, %c0_15] : memref<4x1xf32, #tpu.memory_space<vmem>>, vector<4x1xf32>
    %33 = arith.addf %31, %32 : vector<4x1xf32>
    %c0_16 = arith.constant 0 : index
    %c0_17 = arith.constant 0 : index
    %34 = vector.load %arg4[%c0_16, %c0_17] : memref<4x32xf32, #tpu.memory_space<vmem>>, vector<4x32xf32>
    %35 = vector.broadcast %26 : vector<1x32xf32> to vector<4x32xf32>
    %36 = arith.mulf %34, %35 : vector<4x32xf32>
    %cst_18 = arith.constant dense<0.000000e+00> : vector<4xf32>
    %37 = vector.multi_reduction <add>, %36, %cst_18 [1] : vector<4x32xf32> to vector<4xf32>
    %38 = vector.shape_cast %37 : vector<4xf32> to vector<4x1xf32>
    %c0_19 = arith.constant 0 : index
    %c0_20 = arith.constant 0 : index
    %39 = vector.load %arg6[%c0_19, %c0_20] : memref<4x1xf32, #tpu.memory_space<vmem>>, vector<4x1xf32>
    %40 = arith.addf %38, %39 : vector<4x1xf32>
    %41 = vector.broadcast %33 : vector<4x1xf32> to vector<4x256xf32>
    %42 = arith.mulf %24, %41 : vector<4x256xf32>
    %43 = vector.broadcast %40 : vector<4x1xf32> to vector<4x256xf32>
    %44 = arith.addf %42, %43 : vector<4x256xf32>
    %c0_21 = arith.constant 0 : index
    %c0_22 = arith.constant 0 : index
    %c0_23 = arith.constant 0 : index
    %45 = vector.load %arg7[%c0_21, %c0_22, %c0_23] : memref<1x4x256xf32, #tpu.memory_space<vmem>>, vector<1x4x256xf32>
    %46 = vector.shape_cast %45 : vector<1x4x256xf32> to vector<4x256xf32>
    %47 = vector.shape_cast %44 : vector<4x256xf32> to vector<1x4x256xf32>
    tpu.vector_store %arg7[%c0_21, %c0_22, %c0_23], %47 {strides = array<i32>} : memref<1x4x256xf32, #tpu.memory_space<vmem>>, vector<1x4x256xf32>,
    return
  }
  func.func @transform_0(%arg0: i32) -> (i32, i32, i32) {
    %c0_i32 = arith.constant 0 : i32
    %c0_i32_0 = arith.constant 0 : i32
    %c0_i32_1 = arith.constant 0 : i32
    return %arg0, %c0_i32, %c0_i32_0 : i32, i32, i32
  }
  func.func @transform_1(%arg0: i32) -> (i32, i32, i32) {
    %c0_i32 = arith.constant 0 : i32
    %c0_i32_0 = arith.constant 0 : i32
    %c0_i32_1 = arith.constant 0 : i32
    return %arg0, %c0_i32, %c0_i32_0 : i32, i32, i32
  }
  func.func @transform_2(%arg0: i32) -> (i32, i32) {
    %c0_i32 = arith.constant 0 : i32
    %c0_i32_0 = arith.constant 0 : i32
    %c0_i32_1 = arith.constant 0 : i32
    return %c0_i32, %c0_i32_0 : i32, i32
  }
  func.func @transform_3(%arg0: i32) -> (i32, i32) {
    %c0_i32 = arith.constant 0 : i32
    %c0_i32_0 = arith.constant 0 : i32
    %c0_i32_1 = arith.constant 0 : i32
    return %c0_i32, %c0_i32_0 : i32, i32
  }
  func.func @transform_4(%arg0: i32) -> (i32, i32) {
    %c0_i32 = arith.constant 0 : i32
    %c0_i32_0 = arith.constant 0 : i32
    %c0_i32_1 = arith.constant 0 : i32
    return %c0_i32, %c0_i32_0 : i32, i32
  }
  func.func @transform_5(%arg0: i32) -> (i32, i32) {
    %c0_i32 = arith.constant 0 : i32
    %c0_i32_0 = arith.constant 0 : i32
    %c0_i32_1 = arith.constant 0 : i32
    return %c0_i32, %c0_i32_0 : i32, i32
  }
  func.func @transform_6(%arg0: i32) -> (i32, i32, i32) {
    %c0_i32 = arith.constant 0 : i32
    %c0_i32_0 = arith.constant 0 : i32
    %c0_i32_1 = arith.constant 0 : i32
    return %arg0, %c0_i32, %c0_i32_0 : i32, i32, i32
  }
}

</mosaic_0001>

<bundles_post_ra>
// kernel: tpu_custom_call.1
= control target key start
LH: loop header
LB: loop body
LE: loop exit
PB: predicated region body
PF: predicated region fallthrough
CT: control target
= control target key end

     0   :  { %s947_s0 = inlined_call_operand.hbm [shape: f32[2,4,256], index: 0, kind: input, shape index: {}]   ;;  %s948_s1 = inlined_call_operand.hbm [shape: f32[2,1,32], index: 1, kind: input, shape index: {}]   ;;  %s949_s2 = inlined_call_operand.vmem [shape: f32[4,32], index: 2, kind: input, shape index: {}]   ;;  %s950_s3 = inlined_call_operand.vmem [shape: f32[4,32], index: 3, kind: input, shape index: {}]   ;;  %s951_s4 = inlined_call_operand.vmem [shape: f32[4,1], index: 4, kind: input, shape index: {}]   ;;  %s952_s5 = inlined_call_operand.vmem [shape: f32[4,1], index: 5, kind: input, shape index: {}]   ;;  %s953_s6 = inlined_call_operand.hbm [shape: f32[2,4,256], index: 6, kind: output, shape index: {}]  }
   0x1   :  { %954 = sst [smem:[#allocation11_spill]] %s947_s0 }
   0x2   :  { %11 = vsyncpa [#allocation3], 0 }
   0x3   :  { %13 = vsyncpa [#allocation3 + $0x1], 0 }
   0x4   :  { %14 = vsyncpa [#allocation6], 0 }
   0x5   :  { %16 = vsyncpa [#allocation6 + $0x1], 0 }
   0x6   :  { %17 = vsyncpa [#allocation4], 0 }
   0x7   :  { %19 = vsyncpa [#allocation4 + $0x1], 0  ;;  %s762_s21 = smov 0   ;;  %s764_s22 = smov 0  }
   0x8   :  { %s766_s23 = smov 0   ;;  %s768_s24 = smov 0  }
   0x9 LB: > { %s783_s25 = sadd.s32 4294967295, %s722_s24   ;;  %s515_s26 = sadd.s32 4294967294, %s722_s24   ;;  %s722_s24 = sphi %s768_s24, %s966_s24   ;;  %s718_s23 = sphi %s766_s23, %s965_s23   ;;  %s714_s22 = sphi %s764_s22, %s964_s22   ;;  %s710_s21 = sphi %s762_s21, %s963_s21  }
   0xa   : > { %s787_s27 = sadd.s32 1, %s722_s24   ;;  %s32_s28 = sadd.s32 1, %s718_s23 }
   0xb   : > { %s29_s29 = ssub.s32 %s722_s24, %s787_s27  ;;  %p39_p0 = scmp.ne.s32.totalorder %s718_s23, %s714_s22 }
   0xc   : > { %p30_p1 = scmp.eq.s32.totalorder %s29_s29, 0  ;;  %p40_p2 = scmp.eq.s32.totalorder %s722_s24, 0 }
   0xd   : > { %p45_p3 = scmp.ne.s32.totalorder %s714_s22, %s710_s21  ;;  %p46_p4 = scmp.eq.s32.totalorder %s783_s25, 0 }
   0xe   : > { %s799_s30 = scalar_select %p30_p1, %s718_s23, %s32_s28  }
   0xf   : > { %p801_p5 = por %p40_p2, %p39_p0  ;;  %p805_p6 = por %p46_p4, %p45_p3 }
  0x10   : > { %p179_p7 = scmp.eq.s32.totalorder %s783_s25, 1  ;;  %p185_p8 = scmp.eq.s32.totalorder %s515_s26, 1 }
  0x11   : > { %p548_p10 = scmp.lt.s32.totalorder %s722_s24, 2  ;;  %s821_s11 = sand.u32 1, %s718_s23  }
  0x12   : > { %p812_p11 = por %p179_p7, %p39_p0  ;;  %p816_p12 = por %p185_p8, %p45_p3 }
  0x13   : > { %s529_s12 = sshll.u32 %s722_s24, 3  ;;  %s518_s13 = sshll.u32 %s821_s11, 3 }
  0x14   : > { %s959_s0 = sld [smem:[#allocation11_spill]]  ;;  %s221_s18 = scalar_lea.vmem [#allocation2], %s518_s13 }
  0x15   : > { %s230_s19 = sshll.u32 %s221_s18, 4  ;;  %p830_p13 = pnand %p548_p10, %p801_p5  ;;  %s231_s19 = int_to_ptr.vmem [resolvable:$true] %s230_s19 }
  0x16   : > { %p521_p0 = scmp.ge.s32.totalorder %s722_s24, 1  ;;  %p252_p1 = scmp.lt.s32.totalorder %s722_s24, 3 }
  0x17   : > { %s218_s26 = scalar_lea.sflag [#allocation3], %s821_s11  ;;  %p596_p3 = pneg %p830_p13 }
  0x1a   : > { %s226_s16 = scalar_lea.hbm %s959_s0, %s529_s12  ;;  %s599_s13 = scalar_lea.hbm %s959_s0, 16 }
  0x1b   : > { %s228_s17 = sshll.u32 %s226_s16, 4  ;;  %s229_s17 = int_to_ptr.hbm [resolvable:$true] %s228_s17 }
  0x1c   : > { %s592_s28 = sshra.s32 %s229_s17, 4  ;;  %s593_s28 = int_to_ptr.hbm [resolvable:$true] %s592_s28 }
  0x1d   : > { %s594_s29 = scalar_lea.hbm %s593_s28, 8  ;;  %p600_p5 = scmp.lt.s32.totalorder %s593_s28, %s959_s0 }
  0x1e   : > { %p595_p2 = scmp.ne.s32.totalorder %s593_s28, %s594_s29  ;;  %p601_p8 = scmp.lt.s32.totalorder %s599_s13, %s594_s29 }
  0x20   : > { %p597_p4 = pnand %p596_p3, %p595_p2  ;;  %p602_p10 = por %p601_p8, %p600_p5 }
  0x22   : > { %p598_p7 = pneg %p597_p4 }
  0x24   : > { %p603_p9 = pnand %p602_p10, %p598_p7 }
  0x26   : > { %606 = shalt.err (!%p603_p9)
}
  0x27   : > { %540 = dma.hbm_to_vmem [thread:$0]  (!%p830_p13), %s229_s17, 128, %s231_s19, %s218_s26  }
  0x28   : > { %p854_p2 = pnand %p521_p0, %p252_p1  ;;  %s243_s29 = scalar_lea.hbm %s948_s1, %s722_s24 }
  0x29   : > { %s245_s7 = sshll.u32 %s243_s29, 4  ;;  %s240_s12 = scalar_lea.vmem [#allocation5], %s821_s11  ;;  %s246_s7 = int_to_ptr.hbm [resolvable:$true] %s245_s7 }
  0x2a   : > { %s247_s13 = sshll.u32 %s240_s12, 4  ;;  %s238_s14 = scalar_lea.sflag [#allocation6], %s821_s11  ;;  %s248_s13 = int_to_ptr.vmem [resolvable:$true] %s247_s13 }
  0x2b   : > { %s622_s15 = sshra.s32 %s246_s7, 4  ;;  %s629_s26 = scalar_lea.hbm %s948_s1, 2  ;;  %s623_s15 = int_to_ptr.hbm [resolvable:$true] %s622_s15 }
  0x2c   : > { %s624_s0 = scalar_lea.hbm %s623_s15, 1  ;;  %p630_p4 = scmp.lt.s32.totalorder %s623_s15, %s948_s1 }
  0x2d   : > { %p625_p9 = scmp.ne.s32.totalorder %s623_s15, %s624_s0  ;;  %p631_p7 = scmp.lt.s32.totalorder %s629_s26, %s624_s0 }
  0x2f   : > { %p627_p0 = pnand %p625_p9, %p596_p3  ;;  %p632_p5 = por %p631_p7, %p630_p4 }
  0x31   : > { %p628_p1 = pneg %p627_p0 }
  0x33   : > { %p633_p8 = pnand %p632_p5, %p628_p1 }
  0x35   : > { %636 = shalt.err (!%p633_p8)
}
  0x36   : > { %543 = dma.hbm_to_vmem [thread:$0]  (!%p830_p13), %s246_s7, 16, %s248_s13, %s238_s14  }
  0x37   : > { %256 = sbr.rel (%p854_p2) target bundleno = 292 (0x124), region = 44  ;;  %s878_s11 = sand.u32 (!%p854_p2), 1, %s714_s22  }
  0x38   : > { %s522_s29 = sshll.u32 (!%p854_p2), %s878_s11, 3  ;;  %s259_s12 = scalar_lea.sflag (!%p854_p2), [#allocation3], %s878_s11 }
  0x39   : > { %s262_s0 = scalar_lea.vmem (!%p854_p2), [#allocation2], %s522_s29 }
  0x3c   : > { %697 = dma.done.wait (%p805_p6), %s259_s12, 128  }
  0x3d   : > { %699 = vsyncadd (%p805_p6), %s259_s12, 4294967168  ;;  %s269_s20 = scalar_lea.sflag [#allocation6], %s878_s11  ;;  %s271_s16 = scalar_lea.vmem [#allocation5], %s878_s11 }
  0x3e   : > { %701 = dma.done.wait (%p805_p6), %s269_s20, 16  }
  0x3f   : > { %703 = vsyncadd (%p805_p6), %s269_s20, 4294967280  ;;  %v370_v0 = vld [vmem:[%s949_s2] sm:$0xf]  ;;  %vm375_vm0 = vcmask 257024   ;;  %v305_v2 = vld [vmem:[%s262_s0] sm:$0xff]  ;;  %vm315_vm2 = vcmask 1043456  }
  0x40   : > { %v587_v1 = vld [vmem:[%s271_s16] ss:$0 sm:$0xff]  ;;  %vm306_vm1 = vcmp.ge.f32.partialorder %v305_v2, 0.0  ;;  %v307_v4 = vmul.f32 0.2, %v305_v2  ;;  %v724_v21 = vmov 0  }
  0x41   : > { %v374_v3 = vmul.f32 %v587_v1, %v370_v0  ;;  %v381_v5 = vld [vmem:[%s950_s3] sm:$0xf]  ;;  %585 = vset.pattern.permute.xlu2 %v724_v21  ;;  %586 = vset.pattern.permute.xlu0 %v724_v21  ;;  %v725_v28 = vmov 256.0   ;;  %v726_v46 = vmov 839922192   ;;  %s530_s18 = sshll.u32 %s783_s25, 3 }
  0x42   : > { %v900_v7 = vsel %vm306_vm1, %v305_v2, %v307_v4  ;;  %v382_v8 = vmul.f32 %v587_v1, %v381_v5  ;;  %v379_v22 = vld [vmem:[%s951_s4] sm:$0xf]  ;;  %588 = vrcp.f32 %v725_v28  ;;  %v346_v47 = vunpack.c.l.s4 %v726_v46  ;;  %s421_s0 = scalar_lea.hbm %s953_s6, %s530_s18  ;;  %s304_s20 = scalar_lea.vmem [#allocation7], %s522_s29 }
  0x43   : > { %v376_v6 = vsel %vm375_vm0, %v374_v3, 0.0  ;;  %310 = vst [vmem:[#allocation1] ss:$2 sm:$0xff] %v900_v7  ;;  %v329_v9 = vmul.f32 %v900_v7, %v900_v7  ;;  %v386_v25 = vld [vmem:[%s952_s5] sm:$0xf]  ;;  %s423_s16 = sshll.u32 %s304_s20, 4  ;;  %s424_s16 = int_to_ptr.vmem [resolvable:$true] %s423_s16 }
  0x44   : > { %377 = vadd.xlane.f32.xlu0 %v376_v6  ;;  %v383_v10 = vsel %vm375_vm0, %v382_v8, 0.0  ;;  %v347_v49 = vunpack.c.0.s8 %v346_v47  ;;  %s425_s7 = sshll.u32 %s421_s0, 4  ;;  %s410_s25 = scalar_lea.sflag [#allocation4], %s878_s11  ;;  %s426_s7 = int_to_ptr.hbm [resolvable:$true] %s425_s7 }
  0x45   : > { %s666_s13 = sshra.s32 %s426_s7, 4  ;;  %s672_s29 = scalar_lea.hbm %s953_s6, 16  ;;  %s667_s13 = int_to_ptr.hbm [resolvable:$true] %s666_s13 }
  0x46   : > { %s668_s14 = scalar_lea.hbm %s667_s13, 8  ;;  %p673_p10 = scmp.lt.s32.totalorder %s667_s13, %s953_s6 }
  0x47   : > { %p669_p6 = scmp.ne.s32.totalorder %s667_s13, %s668_s14  ;;  %p674_p2 = scmp.lt.s32.totalorder %s672_s29, %s668_s14 }
  0x48   : > { %v589_v29 = vpop.eup %588 }
  0x49   : > { %v322_v30 = vmul.f32 256.0, %v589_v29  ;;  %vm326_vm3 = vweird.f32 %v589_v29  ;;  %p670_p13 = pnand %p669_p6, %p812_p11  ;;  %p675_p9 = por %p674_p2, %p673_p10 }
  0x4a   : > { %v311_v11 = vld.sshfl [vmem:[#allocation1] sm:$0xff pattern:$0x75316420]  ;;  %v312_v12 = vld.sshfl [vmem:[#allocation1 + $0x8] sm:$0xff pattern:$0x75316420] }
  0x4b   : > { %v316_v13 = vsel %vm315_vm2, %v311_v11, 0.0  ;;  %v317_v14 = vsel %vm315_vm2, %v312_v12, 0.0  ;;  %331 = vst [vmem:[#allocation1] ss:$2 sm:$0xff] %v329_v9  ;;  %v323_v31 = vsub.f32 1.0, %v322_v30  ;;  %p671_p3 = pneg %p670_p13 }
  0x4c   : > { %384 = vadd.xlane.f32.xlu0 %v383_v10  ;;  %v318_v15 = vadd.f32 %v317_v14, %v316_v13 }
  0x4d   : > { %v324_v32 = vmul.f32 %v589_v29, %v323_v31  ;;  %p676_p0 = pnand %p675_p9, %p671_p3 }
  0x4e   : > { %319 = vadd.xlane.f32.xlu1 %v318_v15 }
  0x4f   : > { %v325_v34 = vadd.f32 %v589_v29, %v324_v32 }
  0x51   : > { %v327_v35 = vsel %vm326_vm3, %v589_v29, %v325_v34 }
  0x52   : > { %v332_v16 = vld.sshfl [vmem:[#allocation1] sm:$0xff pattern:$0x75316420]  ;;  %v333_v17 = vld.sshfl [vmem:[#allocation1 + $0x8] sm:$0xff pattern:$0x75316420] }
  0x53   : > { %v336_v18 = vsel %vm315_vm2, %v332_v16, 0.0  ;;  %v337_v19 = vsel %vm315_vm2, %v333_v17, 0.0 }
  0x54   : > { %v338_v20 = vadd.f32 %v337_v19, %v336_v18 }
  0x56   : > { %339 = vadd.xlane.f32.xlu1 %v338_v20 }
  0xb7   : > { %v378_v23 = vpop.xlane.xlu0 %377 }
  0xb8   : > { %v380_v24 = vadd.f32 %v379_v22, %v378_v23 }
  0xba   : > { %390 = vperm.xlu2 %585, %v380_v24  }
  0xbf   : > { %v385_v26 = vpop.xlane.xlu0 %384 }
  0xc0   : > { %v387_v27 = vadd.f32 %v386_v25, %v385_v26 }
  0xc1   : > { %v320_v33 = vpop.xlane.xlu1 %319 }
  0xc2   : > { %400 = vperm.xlu2 %585, %v387_v27   ;;  %v328_v36 = vmul.f32 %v327_v35, %v320_v33 }
  0xc4   : > { %v342_v38 = vmul.f32 %v328_v36, %v328_v36  ;;  %v348_v51 = vperm.slane %v328_v36, %v347_v49 }
  0xc6   : > { %v350_v54 = vsub.f32 %v900_v7, %v348_v51 }
  0xc9   : > { %v340_v37 = vpop.xlane.xlu1 %339 }
  0xca   : > { %v341_v39 = vmul.f32 %v340_v37, %v327_v35 }
  0xcc   : > { %v343_v40 = vsub.f32 %v341_v39, %v342_v38 }
  0xce   : > { %v351_v41 = vadd.f32 1e-08, %v343_v40 }
  0xd0   : > { %590 = vrsqrt.f32 %v351_v41  ;;  %vm358_vm4 = vweird.f32 %v351_v41 }
  0xd6   : > { %v591_v42 = vpop.eup %590 }
  0xd7   : > { %v353_v43 = vmul.f32 %v591_v42, %v351_v41  ;;  %vm359_vm5 = vweird.f32 %v591_v42 }
  0xd8   : > { %vm360_vm6 = vmor %vm358_vm4, %vm359_vm5 }
  0xd9   : > { %v354_v44 = vmul.f32 %v591_v42, %v353_v43 }
  0xdb   : > { %v355_v45 = vmul.f32 0.5, %v354_v44 }
  0xdd   : > { %v356_v48 = vsub.f32 1.5, %v355_v45 }
  0xdf   : > { %v357_v50 = vmul.f32 %v591_v42, %v356_v48 }
  0xe1   : > { %v361_v53 = vsel %vm360_vm6, %v591_v42, %v357_v50 }
  0xe2   : > { %v366_v55 = vperm.slane %v361_v53, %v347_v49 }
  0xe4   : > { %v368_v57 = vmul.f32 %v366_v55, %v350_v54 }
 0x114   : > { %v391_v52 = vpop.permute.xlu2 %390 }
 0x115   : > { %v395_v56 = vperm.slane %v391_v52, %v347_v49 }
 0x117   : > { %v397_v59 = vmul.f32 %v395_v56, %v368_v57 }
 0x11c   : > { %v401_v58 = vpop.permute.xlu2 %400 }
 0x11d   : > { %v405_v60 = vperm.slane %v401_v58, %v347_v49 }
 0x11f   : > { %v407_v61 = vadd.f32 %v405_v60, %v397_v59 }
 0x121   : > { %408 = vst [vmem:[%s304_s20] sm:$0xff] %v407_v61 }
 0x122   : > { %679 = shalt.err (!%p676_p0)
}
 0x123   : > { %535 = dma.vmem_to_hbm [thread:$0]  (%p812_p11), %s424_s16, 128, %s426_s7, %s410_s25  }
 0x124 PF: > { %s437_s11 = sand.u32 1, %s710_s21   ;;  %p962_p1 = scmp.ge.s32.totalorder %s722_s24, 2 }
 0x125   : > { %s438_s26 = scalar_lea.sflag [#allocation4], %s437_s11 }
 0x126   : > { %p545_p4 = pnand %p962_p1, %p816_p12 }
 0x128   : > { %p546_p7 = pneg %p545_p4 }
 0x12a   : > { %705 = dma.done.wait (%p546_p7), %s438_s26, 128  }
 0x12b   : > { %707 = vsyncadd (%p546_p7), %s438_s26, 4294967168  ;;  %p22_p5 = scmp.ge.s32.totalorder %s787_s27, 4   ;;  %s963_s21 = smov %s714_s22 }
 0x12c   : > { %s964_s22 = smov %s718_s23  ;;  %s965_s23 = smov %s799_s30 }
 0x12d   : > { %s966_s24 = smov %s787_s27  ;;  %24 = sbr.rel (!%p22_p5) target bundleno = 9 (0x9), region = 102 }
 0x132   :  { %444 = vsyncpa [#allocation3], 1 }
 0x133   :  { %446 = vsyncpa [#allocation3 + $0x1], 1 }
 0x134   :  { %447 = vsyncpa [#allocation6], 1 }
 0x135   :  { %449 = vsyncpa [#allocation6 + $0x1], 1 }
 0x136   :  { %450 = vsyncpa [#allocation4], 1 }
 0x137   :  { %452 = vsyncpa [#allocation4 + $0x1], 1 }

</bundles_post_ra>
